<compile_context>
chip_gen: v5e
topology: v5e:2x2
jax: 0.10.0
libtpu: 0.0.40
codegen_flags: <defaults>
</compile_context>

<pallas_src>
import functools

import jax
import jax.numpy as jnp
from jax.experimental import pallas as pl
from jax.experimental.pallas import tpu as pltpu

BN_EPS = 1e-5
LN_EPS = 1e-5

LANE = 128
SUBLANE = 8


def _round_up(x, m):
    return (x + m - 1) // m * m


# ---------------- pass 1: spatial-sum reduction (GlobalAvgPool numerator) ----------------
def pool_sum_kernel(x_ref, sum_ref):
    # x_ref: (1, Cp, THW) spatial tile of one batch element
    # sum_ref: (1, 1, Cp) f32 accumulator, resident across the hw (reduction) axis
    @pl.when(pl.program_id(1) == 0)
    def _():
        sum_ref[...] = jnp.zeros_like(sum_ref)

    part = jnp.sum(x_ref[...].astype(jnp.float32), axis=-1)   # (1, Cp)
    sum_ref[...] += part[:, None, :]


# ---------------- pass 2: batched channel mixing -> per-channel gate ----------------
def gate_kernel(sums_ref, bn_ref, wv_t_ref, wfc_t_ref, gate_ref, *, inv_hw):
    # sums_ref: (B, Cp) spatial sums; bn_ref: (2, Cp) folded BN [scale; shift]
    # wv_t/wfc_t: (Cp, Cp) pre-transposed 1x1-conv weights; gate_ref: (B, Cp)
    pooled = sums_ref[...] * inv_hw                                # GlobalAvgPool
    xn = pooled * bn_ref[0:1, :] + bn_ref[1:2, :]                  # eval BN (folded); Dropout3d = identity
    # q/k/LayerNorm/softmax over a singleton axis give alpha == 1 exactly -> att == v;
    # that branch (wq, wk, two LayerNorms, exp, reciprocal) is dead and elided.
    v = jnp.dot(xn, wv_t_ref[...], preferred_element_type=jnp.float32)
    att = jnp.dot(v, wfc_t_ref[...], preferred_element_type=jnp.float32)
    gate_ref[...] = jax.nn.sigmoid(att) + 1.0                      # residual folded: out = x*(sig+1)


# ---------------- pass 3: apply gate over spatial tiles ----------------
def apply_gate_kernel(gate_ref, x_ref, out_ref):
    # gate_ref: (1, Cp, 1); x_ref/out_ref: (1, Cp, THW)
    out_ref[...] = (x_ref[...] * gate_ref[...]).astype(out_ref.dtype)


def channel_attention(x, params):
    """x: (B, C, H, W) float32, NCHW like PyTorch. Returns (B, C, H, W)."""
    B, C, H, W = x.shape
    HW = H * W
    dtype = x.dtype

    # Channel padding to the f32 sublane multiple; spatial tiling on the lane axis.
    Cp = max(SUBLANE, _round_up(C, SUBLANE))
    # Keep each (1, Cp, THW) block <= ~2 MiB so double-buffered in+out stays well below
    # the scoped-VMEM defaults (16/32 MiB) and v7x's 64 MiB physical VMEM.
    max_block_bytes = 2 * 1024 * 1024
    itemsize = jnp.dtype(dtype).itemsize
    max_thw = max(LANE, (max_block_bytes // (Cp * itemsize)) // LANE * LANE)
    thw = min(max_thw, _round_up(HW, LANE))
    HWp = _round_up(HW, thw)
    n_hw = HWp // thw

    x3 = x.reshape(B, C, HW)
    if Cp != C or HWp != HW:
        x3 = jnp.pad(x3, ((0, 0), (0, Cp - C), (0, HWp - HW)))

    # Fold eval-mode BatchNorm into one scale/shift pair (no sqrt/div inside the kernel).
    a = params["bn_gamma"] / jnp.sqrt(params["bn_rvar"] + BN_EPS)        # (1, C)
    b = params["bn_beta"] - params["bn_rmean"] * a                       # (1, C)
    bn = jnp.zeros((2, Cp), jnp.float32).at[0, :C].set(a[0]).at[1, :C].set(b[0])

    # Pre-transpose the 1x1-conv weights outside the kernel (zero-pad to Cp).
    wv_t = jnp.zeros((Cp, Cp), jnp.float32).at[:C, :C].set(params["wv"].T)
    wfc_t = jnp.zeros((Cp, Cp), jnp.float32).at[:C, :C].set(params["wfc"].T)

    # --- pass 1: spatial sums per (batch, channel) ---
    sums3 = pl.pallas_call(
        pool_sum_kernel,
        out_shape=jax.ShapeDtypeStruct((B, 1, Cp), jnp.float32),
        grid_spec=pltpu.PrefetchScalarGridSpec(
            num_scalar_prefetch=0,
            grid=(B, n_hw),
            in_specs=[pl.BlockSpec((1, Cp, thw), lambda bb, h: (bb, 0, h))],
            out_specs=pl.BlockSpec((1, 1, Cp), lambda bb, h: (bb, 0, 0)),
        ),
        compiler_params=pltpu.CompilerParams(
            dimension_semantics=("parallel", "arbitrary")),
    )(x3)
    sums2 = sums3.reshape(B, Cp)

    # --- pass 2: whole-batch channel mixing (one (B,Cp)x(Cp,Cp) matmul chain) ---
    gate2 = pl.pallas_call(
        functools.partial(gate_kernel, inv_hw=1.0 / float(HW)),
        out_shape=jax.ShapeDtypeStruct((B, Cp), jnp.float32),
    )(sums2, bn, wv_t, wfc_t)
    gate3 = gate2[:, :, None]                                            # (B, Cp, 1)

    # --- pass 3: out = x * (sigmoid(att) + 1), tiled over spatial ---
    out3 = pl.pallas_call(
        apply_gate_kernel,
        out_shape=jax.ShapeDtypeStruct((B, Cp, HWp), dtype),
        grid_spec=pltpu.PrefetchScalarGridSpec(
            num_scalar_prefetch=0,
            grid=(B, n_hw),
            in_specs=[
                pl.BlockSpec((1, Cp, 1), lambda bb, h: (bb, 0, 0)),       # gate
                pl.BlockSpec((1, Cp, thw), lambda bb, h: (bb, 0, h)),     # x tile
            ],
            out_specs=pl.BlockSpec((1, Cp, thw), lambda bb, h: (bb, 0, h)),
        ),
        compiler_params=pltpu.CompilerParams(
            dimension_semantics=("parallel", "parallel")),
    )(gate3, x3)

    return out3[:, :C, :HW].reshape(B, C, H, W)


def reference_forward(x, p):
    """Pure-JAX reference of the PyTorch forward (eval mode), including the full
    q/k/LayerNorm/softmax path (which is mathematically identity here)."""
    B, C, H, W = x.shape
    pooled = jnp.mean(x.reshape(B, C, -1), axis=-1)                       # (B, C)
    xn = (pooled - p["bn_rmean"]) / jnp.sqrt(p["bn_rvar"] + BN_EPS)
    xn = xn * p["bn_gamma"] + p["bn_beta"]

    def ln(t):
        mu = jnp.mean(t, axis=-1, keepdims=True)
        var = jnp.mean((t - mu) ** 2, axis=-1, keepdims=True)
        return (t - mu) / jnp.sqrt(var + LN_EPS) * p["ln_w"] + p["ln_b"]

    q = ln(xn @ p["wq"].T)
    k = ln(xn @ p["wk"].T)
    v = xn @ p["wv"].T
    qk = jnp.sum(q * k, axis=-1, keepdims=True)                           # (B, 1)
    alpha = jax.nn.softmax(qk, axis=-1)                                   # == 1
    att = (alpha * v) @ p["wfc"].T
    gate = jax.nn.sigmoid(att)[:, :, None, None]                          # (B, C, 1, 1)
    return x * gate + x


def make_params(key, C):
    ks = jax.random.split(key, 8)
    scale = 1.0 / jnp.sqrt(C)
    params = {
        # BatchNorm2d (eval-mode running stats); Dropout3d is identity at eval.
        "bn_gamma": jnp.ones((1, C), jnp.float32) * 1.1,
        "bn_beta": jnp.full((1, C), 0.05, jnp.float32),
        "bn_rmean": jax.random.normal(ks[0], (1, C), jnp.float32) * 0.1,
        "bn_rvar": jnp.abs(jax.random.normal(ks[1], (1, C), jnp.float32)) * 0.5 + 0.75,
        # 1x1 conv weights, (out_channels, in_channels)
        "wq": jax.random.normal(ks[2], (C, C), jnp.float32) * scale,
        "wk": jax.random.normal(ks[3], (C, C), jnp.float32) * scale,
        "wv": jax.random.normal(ks[4], (C, C), jnp.float32) * scale,
        "wfc": jax.random.normal(ks[5], (C, C), jnp.float32) * scale,
        # LayerNorm([C, 1]) affine params (only used by the reference path; the
        # q/k/LN/softmax branch provably never affects the output).
        "ln_w": jnp.ones((1, C), jnp.float32) + 0.1 * jax.random.normal(ks[6], (1, C), jnp.float32),
        "ln_b": 0.1 * jax.random.normal(ks[7], (1, C), jnp.float32),
    }
    return params


if __name__ == "__main__":
    key = jax.random.PRNGKey(0)
    k_x, k_p = jax.random.split(key)

    B, C, H, W = 2, 4, 16, 16
    x = jax.random.normal(k_x, (B, C, H, W), jnp.float32)
    params = make_params(k_p, C)

    out = channel_attention(x, params)
    out = jax.block_until_ready(out)

    ref = reference_forward(x, params)
    assert out.shape == (B, C, H, W)
    assert jnp.allclose(out, ref, atol=1e-5, rtol=1e-5), "mismatch vs reference"

    # TODO(synk): training-mode BatchNorm batch-stats and Dropout3d masking are
    # not modeled (inference semantics only).
    print("KERNEL_OK")
</pallas_src>

<mosaic_0001>
module attributes {stable_mosaic.version = 11 : i64} {
  func.func @pool_sum_kernel(%arg0: i32, %arg1: i32, %arg2: memref<1x8x256xf32, #tpu.memory_space<vmem>>, %arg3: memref<1x1x8xf32, #tpu.memory_space<vmem>>) attributes {dimension_semantics = [#tpu.dimension_semantics<parallel>, #tpu.dimension_semantics<arbitrary>], iteration_bounds = array<i64: 2, 1>, scalar_prefetch = 0 : i64, scratch_operands = 0 : i64, tpu.core_type = #tpu.core_type<tc>, window_params = [{transform_indices = @transform_0, window_bounds = array<i64: 1, 8, 256>}, {transform_indices = @transform_1, window_bounds = array<i64: 1, 1, 8>}]} {
    %c0_i32 = arith.constant 0 : i32
    %0 = arith.cmpi eq, %arg1, %c0_i32 : i32
    %1 = arith.extui %0 : i1 to i32
    %c0_i32_0 = arith.constant 0 : i32
    %2 = arith.cmpi ne, %1, %c0_i32_0 : i32
    scf.if %2 {
      %cst_9 = arith.constant 0.000000e+00 : f32
      %9 = vector.broadcast %cst_9 : f32 to vector<1x1x8xf32>
      %c0_10 = arith.constant 0 : index
      %c0_11 = arith.constant 0 : index
      %c0_12 = arith.constant 0 : index
      %10 = vector.load %arg3[%c0_10, %c0_11, %c0_12] : memref<1x1x8xf32, #tpu.memory_space<vmem>>, vector<1x1x8xf32>
      tpu.vector_store %arg3[%c0_10, %c0_11, %c0_12], %9 {strides = array<i32>} : memref<1x1x8xf32, #tpu.memory_space<vmem>>, vector<1x1x8xf32>,
    } else {
    }
    %c0 = arith.constant 0 : index
    %c0_1 = arith.constant 0 : index
    %c0_2 = arith.constant 0 : index
    %3 = vector.load %arg2[%c0, %c0_1, %c0_2] : memref<1x8x256xf32, #tpu.memory_space<vmem>>, vector<1x8x256xf32>
    %cst = arith.constant dense<0.000000e+00> : vector<1x8xf32>
    %4 = vector.multi_reduction <add>, %3, %cst [2] : vector<1x8x256xf32> to vector<1x8xf32>
    %c0_3 = arith.constant 0 : index
    %c0_4 = arith.constant 0 : index
    %c0_5 = arith.constant 0 : index
    %5 = vector.load %arg3[%c0_3, %c0_4, %c0_5] : memref<1x1x8xf32, #tpu.memory_space<vmem>>, vector<1x1x8xf32>
    %6 = vector.shape_cast %4 : vector<1x8xf32> to vector<1x1x8xf32>
    %7 = arith.addf %5, %6 : vector<1x1x8xf32>
    %c0_6 = arith.constant 0 : index
    %c0_7 = arith.constant 0 : index
    %c0_8 = arith.constant 0 : index
    %8 = vector.load %arg3[%c0_6, %c0_7, %c0_8] : memref<1x1x8xf32, #tpu.memory_space<vmem>>, vector<1x1x8xf32>
    tpu.vector_store %arg3[%c0_6, %c0_7, %c0_8], %7 {strides = array<i32>} : memref<1x1x8xf32, #tpu.memory_space<vmem>>, vector<1x1x8xf32>,
    return
  }
  func.func @transform_0(%arg0: i32, %arg1: i32) -> (i32, i32, i32) {
    %c0_i32 = arith.constant 0 : i32
    %c0_i32_0 = arith.constant 0 : i32
    return %arg0, %c0_i32, %arg1 : i32, i32, i32
  }
  func.func @transform_1(%arg0: i32, %arg1: i32) -> (i32, i32, i32) {
    %c0_i32 = arith.constant 0 : i32
    %c0_i32_0 = arith.constant 0 : i32
    %c0_i32_1 = arith.constant 0 : i32
    return %arg0, %c0_i32, %c0_i32_0 : i32, i32, i32
  }
}

</mosaic_0001>

<bundles_post_ra>
// kernel: tpu_custom_call.1
= control target key start
LH: loop header
LB: loop body
LE: loop exit
PB: predicated region body
PF: predicated region fallthrough
CT: control target
= control target key end

     0   :  { %6 = vsyncpa [#allocation3], 0  ;;  %s620_s0 = inlined_call_operand.hbm [shape: f32[2,8,256], index: 0, kind: input, shape index: {}]   ;;  %s621_s1 = inlined_call_operand.hbm [shape: f32[2,1,8], index: 1, kind: output, shape index: {}]  }
   0x1   :  { %8 = vsyncpa [#allocation3 + $0x1], 0 }
   0x2   :  { %9 = vsyncpa [#allocation4], 0 }
   0x3   :  { %11 = vsyncpa [#allocation4 + $0x1], 0  ;;  %s491_s6 = smov 0   ;;  %s493_s7 = smov 0  }
   0x4   :  { %s495_s8 = smov 0   ;;  %s497_s9 = smov 0  }
   0x5   :  { %s499_s10 = smov 0   ;;  %s501_s11 = smov 0  }
   0x6 LB: > { %s288_s12 = sadd.s32 4294967295, %s477_s11   ;;  %s289_s13 = sadd.s32 4294967294, %s477_s11   ;;  %s477_s11 = sphi %s501_s11, %s17_s11   ;;  %s473_s10 = sphi %s499_s10, %s630_s10   ;;  %s469_s9 = sphi %s497_s9, %s629_s9   ;;  %s465_s8 = sphi %s495_s8, %s628_s8   ;;  %s461_s7 = sphi %s493_s7, %s627_s7   ;;  %s457_s6 = sphi %s491_s6, %s626_s6  }
   0x7   : > { %s29_s14 = sadd.s32 1, %s473_s10  ;;  %s38_s15 = sadd.s32 1, %s465_s8 }
   0x8   : > { %p31_p0 = scmp.ge.s32.totalorder %s29_s14, 2  ;;  %p45_p1 = scmp.ne.s32.totalorder %s465_s8, %s461_s7 }
   0x9   : > { %p46_p2 = scmp.eq.s32.totalorder %s477_s11, 0  ;;  %p51_p3 = scmp.ne.s32.totalorder %s461_s7, %s457_s6 }
   0xa   : > { %s632_s14 = smov (%p31_p0, %s29_s14), 0  ;;  %p52_p5 = scmp.eq.s32.totalorder %s288_s12, 0 }
   0xb   : > { %p532_p4 = por %p46_p2, %p45_p1  ;;  %s33_s17 = ssub.s32 %s473_s10, %s632_s14 }
   0xc   : > { %p75_p6 = scmp.eq.s32.totalorder %s288_s12, 1  ;;  %p36_p7 = scmp.eq.s32.totalorder %s33_s17, 0 }
   0xd   : > { %p538_p8 = por %p52_p5, %p51_p3  ;;  %p81_p10 = scmp.eq.s32.totalorder %s289_s13, 1 }
   0xe   : > { %p542_p9 = por %p75_p6, %p45_p1  ;;  %p291_p12 = scmp.ge.s32.totalorder %s477_s11, 2 }
   0xf   : > { %s547_s20 = scalar_select %p36_p7, %s465_s8, %s38_s15  }
  0x10   : > { %p549_p11 = por %p81_p10, %p51_p3  ;;  %p312_p13 = scmp.lt.s32.totalorder %s477_s11, 2 }
  0x11   : > { %s101_s22 = sand.u32 1, %s465_s8   ;;  %s299_s24 = sshll.u32 %s473_s10, 4 }
  0x12   : > { %s292_s23 = sshll.u32 %s101_s22, 4  ;;  %s112_s27 = scalar_lea.hbm %s620_s0, %s299_s24 }
  0x13   : > { %s105_s28 = scalar_lea.vmem [#allocation2], %s292_s23  ;;  %s114_s30 = sshll.u32 %s112_s27, 4  ;;  %s115_s30 = int_to_ptr.hbm [resolvable:$true] %s114_s30 }
  0x14   : > { %s116_s29 = sshll.u32 %s105_s28, 4  ;;  %p305_p0 = pnand %p312_p13, %p532_p4  ;;  %s117_s29 = int_to_ptr.vmem [resolvable:$true] %s116_s29 }
  0x15   : > { %p295_p1 = scmp.ge.s32.totalorder %s477_s11, 1  ;;  %p121_p2 = scmp.lt.s32.totalorder %s477_s11, 3 }
  0x16   : > { %s102_s2 = scalar_lea.sflag [#allocation3], %s101_s22 }
  0x17   : > { %307 = dma.hbm_to_vmem [thread:$0]  (!%p305_p0), %s115_s30, 256, %s117_s29, %s102_s2  }
  0x18   : > { %p122_p3 = pnand %p295_p1, %p121_p2 }
  0x19   : > { %s565_s3 = sand.u32 (!%p122_p3), 1, %s461_s7  }
  0x1a   : > { %125 = sbr.rel (%p122_p3) target bundleno = 290 (0x122), region = 24  ;;  %s296_s4 = sshll.u32 (!%p122_p3), %s565_s3, 4 }
  0x1b   : > { %s128_s5 = scalar_lea.sflag (!%p122_p3), [#allocation3], %s565_s3  ;;  %s131_s12 = scalar_lea.vmem (!%p122_p3), [#allocation2], %s296_s4 }
  0x1f   : > { %448 = dma.done.wait (%p538_p8), %s128_s5, 256  }
  0x20   : > { %450 = vsyncadd (%p538_p8), %s128_s5, 4294967040  ;;  %v157_v0 = vld [vmem:[%s131_s12] sm:$0xff]  ;;  %v158_v1 = vld [vmem:[%s131_s12 + $0x8] sm:$0xff]  ;;  %v479_v3 = vmov 0   ;;  %vm155_vm0 = vcmask 57344   ;;  %s574_s13 = scalar_lea.vmem [#allocation5], %s565_s3  ;;  %v191_v15 = vlaneseq  ;;  %s207_s17 = scalar_lea.hbm %s621_s1, %s469_s9 }
  0x21   : > { %v159_v2 = vadd.f32 %v158_v1, %v157_v0  ;;  %364 = vset.pattern.permute.xlu0 %v479_v3  ;;  %v480_v4 = vmov 0.0   ;;  %s209_s18 = sshll.u32 %s574_s13, 4  ;;  %s211_s22 = sshll.u32 %s207_s17, 4  ;;  %s210_s18 = int_to_ptr.vmem [resolvable:$true] %s209_s18  ;;  %s212_s22 = int_to_ptr.hbm [resolvable:$true] %s211_s22 }
  0x22   : > { %156 = vst.msk [vmem:[%s574_s13] sm:$0x1] %vm155_vm0, %v480_v4  ;;  %v192_v16 = vand.u32 127, %v191_v15  ;;  %s199_s23 = scalar_lea.sflag [#allocation4], %s565_s3  ;;  %s409_s24 = sshra.s32 %s212_s22, 4  ;;  %s410_s24 = int_to_ptr.hbm [resolvable:$true] %s409_s24 }
  0x23   : > { %160 = vadd.xlane.f32.xlu0 %v159_v2  ;;  %s411_s25 = scalar_lea.hbm %s410_s24, 1  ;;  %s415_s27 = scalar_lea.hbm %s621_s1, 2 }
  0x24   : > { %p412_p4 = scmp.ne.s32.totalorder %s410_s24, %s411_s25  ;;  %p416_p7 = scmp.lt.s32.totalorder %s410_s24, %s621_s1 }
  0x25   : > { %p417_p8 = scmp.lt.s32.totalorder %s415_s27, %s411_s25 }
  0x26   : > { %p413_p5 = pnand %p412_p4, %p542_p9 }
  0x27   : > { %p418_p10 = por %p417_p8, %p416_p7 }
  0x28   : > { %p414_p6 = pneg %p413_p5 }
  0x29   : > { %v162_v18 = vld [vmem:[%s574_s13] sm:$0x1] }
  0x2a   : > { %p419_p13 = pnand %p418_p10, %p414_p6 }
  0x96   : > { %v161_v5 = vpop.xlane.xlu0 %160 }
  0x97   : > { %v164_v6 = vperm.slane %v161_v5, 0  ;;  %v165_v7 = vperm.slane %v161_v5, 1  ;;  %v166_v8 = vperm.slane %v161_v5, 2  ;;  %v167_v9 = vperm.slane %v161_v5, 3 }
  0x98   : > { %v168_v10 = vperm.slane %v161_v5, 4  ;;  %v169_v11 = vperm.slane %v161_v5, 5  ;;  %v170_v12 = vperm.slane %v161_v5, 6  ;;  %v171_v13 = vperm.slane %v161_v5, 7 }
  0x99   : > { %172 = vst [vmem:[#allocation1] ss:$9 sm:$0xff] %v164_v6 }
  0x9a   : > { %174 = vst [vmem:[#allocation1 + $0x1] ss:$9 sm:$0xff] %v165_v7 }
  0x9b   : > { %176 = vst [vmem:[#allocation1 + $0x2] ss:$9 sm:$0xff] %v166_v8 }
  0x9c   : > { %178 = vst [vmem:[#allocation1 + $0x3] ss:$9 sm:$0xff] %v167_v9 }
  0x9d   : > { %180 = vst [vmem:[#allocation1 + $0x4] ss:$9 sm:$0xff] %v168_v10 }
  0x9e   : > { %182 = vst [vmem:[#allocation1 + $0x5] ss:$9 sm:$0xff] %v169_v11 }
  0x9f   : > { %184 = vst [vmem:[#allocation1 + $0x6] ss:$9 sm:$0xff] %v170_v12 }
  0xa0   : > { %186 = vst [vmem:[#allocation1 + $0x7] ss:$9 sm:$0xff] %v171_v13 }
  0xa7   : > { %v187_v14 = vld [vmem:[#allocation1] sm:$0xff] }
  0xa8   : > { %189 = vperm.xlu0 %364, %v187_v14  }
 0x11a   : > { %v190_v17 = vpop.permute.xlu0 %189 }
 0x11b   : > { %v193_v19 = vperm.slane %v190_v17, %v192_v16 }
 0x11d   : > { %v195_v20 = vadd.f32 %v193_v19, %v162_v18 }
 0x11f   : > { %197 = vst.msk [vmem:[%s574_s13] sm:$0x1] %vm155_vm0, %v195_v20 }
 0x120   : > { %422 = shalt.err (!%p419_p13)
}
 0x121   : > { %302 = dma.vmem_to_hbm [thread:$0]  (%p542_p9), %s210_s18, 16, %s212_s22, %s199_s23  }
 0x122 PF: > { %s223_s30 = sand.u32 1, %s457_s6   ;;  %p309_p0 = pnand %p291_p12, %p549_p11 }
 0x123   : > { %s224_s2 = scalar_lea.sflag [#allocation4], %s223_s30 }
 0x124   : > { %p310_p1 = pneg %p309_p0 }
 0x126   : > { %452 = dma.done.wait (%p310_p1), %s224_s2, 16  }
 0x127   : > { %454 = vsyncadd (%p310_p1), %s224_s2, 4294967280  ;;  %s17_s11 = sadd.s32 1, %s477_s11   ;;  %s626_s6 = smov %s461_s7 }
 0x128   : > { %p14_p2 = scmp.ge.s32.totalorder %s17_s11, 4   ;;  %s627_s7 = smov %s465_s8 }
 0x129   : > { %s628_s8 = smov %s547_s20  ;;  %s629_s9 = smov %s473_s10 }
 0x12a   : > { %s630_s10 = smov %s632_s14  ;;  %16 = sbr.rel (!%p14_p2) target bundleno = 6 (0x6), region = 80 }
 0x12f   :  { %229 = vsyncpa [#allocation3], 1 }
 0x130   :  { %231 = vsyncpa [#allocation3 + $0x1], 1 }
 0x131   :  { %232 = vsyncpa [#allocation4], 1 }
 0x132   :  { %234 = vsyncpa [#allocation4 + $0x1], 1 }

</bundles_post_ra>
